<compile_context>
chip_gen: v5e
topology: v5e:2x2
jax: 0.10.0
libtpu: 0.0.40
codegen_flags: <defaults>
</compile_context>

<pallas_src>
import math

import jax
import jax.numpy as jnp
from jax.experimental import pallas as pl
from jax.experimental.pallas import tpu as pltpu


def _round_up(x: int, m: int) -> int:
    return ((x + m - 1) // m) * m


def _sinusoidal_kernel(*refs):
    # With MXU expansion : (time_ref, const_ref, onehot_ref, out_ref)
    # Without            : (time_ref, const_ref, out_ref)
    if len(refs) == 4:
        time_ref, const_ref, onehot_ref, out_ref = refs
    else:
        time_ref, const_ref, out_ref = refs
        onehot_ref = None

    tb, pack = time_ref.shape
    lanes = out_ref.shape[1]

    tvals = time_ref[...]                                       # (tb, pack) f32

    if onehot_ref is not None:
        # Expand packed timesteps to per-lane values on the otherwise-idle MXU.
        # One-hot weights (0/1) make the matmul exact; HIGHEST precision keeps the
        # f32 timesteps unrounded (no bf16 single-pass rounding of ~1e3-rad args).
        t = jax.lax.dot_general(
            tvals, onehot_ref[...],
            dimension_numbers=(((1,), (0,)), ((), ())),
            preferred_element_type=jnp.float32,
            precision=jax.lax.Precision.HIGHEST)
    elif pack > 1:
        # Small pack (2 or 4): cheap select chain on the VPU.
        dim = lanes // pack
        t = jnp.broadcast_to(tvals[:, 0:1], (tb, lanes))
        lane = jax.lax.broadcasted_iota(jnp.int32, (tb, lanes), 1)
        for q in range(1, pack):
            t = jnp.where(lane >= q * dim,
                          jnp.broadcast_to(tvals[:, q:q + 1], (tb, lanes)), t)
    else:
        t = jnp.broadcast_to(tvals[:, 0:1], (tb, lanes))

    # cos(x) == sin(x + pi/2): one FMA + one full-width sin + one lane-dense store.
    args = t * const_ref[0:1, :] + const_ref[1:2, :]            # (tb, lanes)
    out_ref[...] = jnp.sin(args).astype(out_ref.dtype)


def sinusoidal_position_embeddings(time: jax.Array, dim: int, *,
                                   block_rows: int = 4096,
                                   out_dtype=jnp.float32) -> jax.Array:
    """time: [B] -> [B, dim] embeddings (sin half | cos half)."""
    assert dim % 2 == 0 and dim >= 4, "dim must be even and >= 4"
    b = time.shape[0]
    half = dim // 2

    # ---- lane layout: always a multiple-of-128 last dim (full-lane stores) -----
    lcm = dim * 128 // math.gcd(dim, 128)
    if dim % 128 == 0:
        pack, lanes, lane_pad = 1, dim, 0
    elif lcm <= 2048:
        pack, lanes, lane_pad = lcm // dim, lcm, 0          # row packing, 0 waste
    else:
        lanes = _round_up(dim, 128)                          # pad lanes, slice later
        pack, lane_pad = 1, lanes - dim
    use_mxu = pack >= 8

    # ---- lane constants (precomputed once, outside the kernel) -----------------
    scale = math.log(10000.0) / (half - 1)
    freqs = jnp.exp(jnp.arange(half, dtype=jnp.float32) * (-scale))      # (half,)
    freqs_full = jnp.concatenate([freqs, freqs])                          # (dim,)
    phase_full = jnp.concatenate(
        [jnp.zeros((half,), jnp.float32),
         jnp.full((half,), math.pi / 2, jnp.float32)])                    # (dim,)
    if lane_pad:
        freqs_full = jnp.pad(freqs_full, (0, lane_pad))
        phase_full = jnp.pad(phase_full, (0, lane_pad))
    const = jnp.stack([jnp.tile(freqs_full, pack),
                       jnp.tile(phase_full, pack)])                       # (2, lanes)

    onehot = None
    if use_mxu:
        lane_group = jnp.arange(lanes, dtype=jnp.int32) // dim
        onehot = (lane_group[None, :] ==
                  jnp.arange(pack, dtype=jnp.int32)[:, None]).astype(jnp.float32)

    # ---- batch tiling -----------------------------------------------------------
    rows = -(-b // pack)
    bytes_per = jnp.dtype(out_dtype).itemsize
    row_align = 16 if bytes_per < 4 else 8                 # bf16 needs (16,128) tiles

    # Max rows per tile: user knob capped so one output tile is <= ~2 MiB
    # (2-4 MiB double-buffered -> fits v7x's 64 MiB VMEM with lots of headroom).
    tb_max = max(row_align, min(block_rows, (2 << 20) // max(1, lanes * bytes_per)))
    tb_max = max(row_align, (tb_max // row_align) * row_align)
    num_tiles = -(-rows // tb_max)
    # v7x megacore: guarantee >= 2 grid steps when there is real work to split.
    if num_tiles == 1 and rows * lanes * bytes_per >= (512 << 10):
        num_tiles = 2
    tb = _round_up(-(-rows // num_tiles), row_align)
    rows_padded = num_tiles * tb
    b_padded = rows_padded * pack

    time_f32 = time.astype(jnp.float32)
    if b_padded != b:
        time_f32 = jnp.pad(time_f32, (0, b_padded - b))
    time2d = time_f32.reshape(rows_padded, pack)

    in_specs = [
        pl.BlockSpec((tb, pack), lambda i: (i, 0)),        # packed timesteps
        pl.BlockSpec((2, lanes), lambda i: (0, 0)),        # freqs|phase (resident)
    ]
    args = [time2d, const]
    if use_mxu:
        in_specs.append(pl.BlockSpec((pack, lanes), lambda i: (0, 0)))  # one-hot
        args.append(onehot)

    out = pl.pallas_call(
        _sinusoidal_kernel,
        out_shape=jax.ShapeDtypeStruct((rows_padded, lanes), out_dtype),
        grid=(num_tiles,),
        in_specs=in_specs,
        out_specs=pl.BlockSpec((tb, lanes), lambda i: (i, 0)),
        compiler_params=pltpu.CompilerParams(
            dimension_semantics=("parallel",),
            vmem_limit_bytes=32 * 1024 * 1024),
    )(*args)

    # Layout plumbing back to [B, dim]: unpack rows and drop any lane padding.
    return out.reshape(rows_padded * pack, lanes // pack)[:b, :dim]


def _reference(time: jax.Array, dim: int) -> jax.Array:
    half = dim // 2
    emb = math.log(10000.0) / (half - 1)
    emb = jnp.exp(jnp.arange(half, dtype=jnp.float32) * -emb)
    emb = time.astype(jnp.float32)[:, None] * emb[None, :]
    return jnp.concatenate([jnp.sin(emb), jnp.cos(emb)], axis=-1)


if __name__ == "__main__":
    key = jax.random.PRNGKey(0)
    batch = 8

    # Diffusion timesteps: positive floats in [0, 1000).
    time = jax.random.uniform(key, (batch,), dtype=jnp.float32,
                              minval=0.0, maxval=1000.0)

    # Exercise all three expansion paths:
    #   dim=64  -> pack=2  (where-chain),  dim=128 -> pack=1,  dim=8 -> pack=16 (MXU).
    for dim in (64, 128, 8):
        out = jax.block_until_ready(sinusoidal_position_embeddings(time, dim))
        ref = _reference(time, dim)
        assert out.shape == (batch, dim) and out.dtype == jnp.float32
        max_err = float(jnp.max(jnp.abs(out - ref)))
        # f32 transcendentals + cos(x)=sin(x+pi/2) on ~1e3-rad args -> ~1e-4 noise.
        assert max_err < 5e-3, f"dim={dim}: mismatch vs reference, max abs err {max_err}"

    print("KERNEL_OK")
</pallas_src>

<mosaic_0001>
module attributes {stable_mosaic.version = 11 : i64} {
  func.func @_sinusoidal_kernel(%arg0: i32, %arg1: memref<8x2xf32, #tpu.memory_space<vmem>>, %arg2: memref<2x128xf32, #tpu.memory_space<vmem>>, %arg3: memref<8x128xf32, #tpu.memory_space<vmem>>) attributes {dimension_semantics = [#tpu.dimension_semantics<parallel>], iteration_bounds = array<i64: 1>, scalar_prefetch = 0 : i64, scratch_operands = 0 : i64, tpu.core_type = #tpu.core_type<tc>, window_params = [{transform_indices = @transform_0, window_bounds = array<i64: 8, 2>}, {pipeline_mode = #tpu.pipeline_mode<synchronous>, transform_indices = @transform_1, window_bounds = array<i64: 2, 128>}, {transform_indices = @transform_2, window_bounds = array<i64: 8, 128>}]} {
    %c0 = arith.constant 0 : index
    %c0_0 = arith.constant 0 : index
    %0 = vector.load %arg1[%c0, %c0_0] : memref<8x2xf32, #tpu.memory_space<vmem>>, vector<8x2xf32>
    %1 = vector.extract_strided_slice %0 {offsets = [0, 0], sizes = [8, 1], strides = [1, 1]} : vector<8x2xf32> to vector<8x1xf32>
    %2 = vector.shape_cast %1 : vector<8x1xf32> to vector<8x1xf32>
    %3 = vector.broadcast %2 : vector<8x1xf32> to vector<8x128xf32>
    %4 = tpu.iota {dimensions = array<i32: 1>} : vector<8x128xi32>
    %c64_i32 = arith.constant 64 : i32
    %5 = vector.broadcast %c64_i32 : i32 to vector<8x128xi32>
    %6 = arith.cmpi sge, %4, %5 : vector<8x128xi32>
    %7 = vector.extract_strided_slice %0 {offsets = [0, 1], sizes = [8, 1], strides = [1, 1]} : vector<8x2xf32> to vector<8x1xf32>
    %8 = vector.shape_cast %7 : vector<8x1xf32> to vector<8x1xf32>
    %9 = vector.broadcast %8 : vector<8x1xf32> to vector<8x128xf32>
    %10 = arith.select %6, %9, %3 : vector<8x128xi1>, vector<8x128xf32>
    %c0_1 = arith.constant 0 : index
    %c0_2 = arith.constant 0 : index
    %11 = vector.load %arg2[%c0_1, %c0_2] : memref<2x128xf32, #tpu.memory_space<vmem>>, vector<1x128xf32>
    %12 = vector.broadcast %11 : vector<1x128xf32> to vector<8x128xf32>
    %13 = arith.mulf %10, %12 : vector<8x128xf32>
    %c1 = arith.constant 1 : index
    %c0_3 = arith.constant 0 : index
    %14 = vector.load %arg2[%c1, %c0_3] : memref<2x128xf32, #tpu.memory_space<vmem>>, vector<1x128xf32>
    %15 = vector.broadcast %14 : vector<1x128xf32> to vector<8x128xf32>
    %16 = arith.addf %13, %15 : vector<8x128xf32>
    %17 = math.sin %16 : vector<8x128xf32>
    %c0_4 = arith.constant 0 : index
    %c0_5 = arith.constant 0 : index
    %18 = vector.load %arg3[%c0_4, %c0_5] : memref<8x128xf32, #tpu.memory_space<vmem>>, vector<8x128xf32>
    tpu.vector_store %arg3[%c0_4, %c0_5], %17 {strides = array<i32>} : memref<8x128xf32, #tpu.memory_space<vmem>>, vector<8x128xf32>,
    return
  }
  func.func @transform_0(%arg0: i32) -> (i32, i32) {
    %c0_i32 = arith.constant 0 : i32
    %c0_i32_0 = arith.constant 0 : i32
    return %arg0, %c0_i32 : i32, i32
  }
  func.func @transform_1(%arg0: i32) -> (i32, i32) {
    %c0_i32 = arith.constant 0 : i32
    %c0_i32_0 = arith.constant 0 : i32
    %c0_i32_1 = arith.constant 0 : i32
    return %c0_i32, %c0_i32_0 : i32, i32
  }
  func.func @transform_2(%arg0: i32) -> (i32, i32) {
    %c0_i32 = arith.constant 0 : i32
    %c0_i32_0 = arith.constant 0 : i32
    return %arg0, %c0_i32 : i32, i32
  }
}

</mosaic_0001>

<bundles_post_ra>
// kernel: tpu_custom_call.1
= control target key start
LH: loop header
LB: loop body
LE: loop exit
PB: predicated region body
PF: predicated region fallthrough
CT: control target
= control target key end

     0   :  { %v246_v1 = vmov 0   ;;  %s341_s0 = inlined_call_operand.vmem [shape: f32[8,2], index: 0, kind: input, shape index: {}]   ;;  %s342_s1 = inlined_call_operand.vmem [shape: f32[2,128], index: 1, kind: input, shape index: {}]   ;;  %s343_s2 = inlined_call_operand.hbm [shape: f32[8,128], index: 2, kind: output, shape index: {}]  }
   0x1   :  { %v12_v0 = vld [vmem:[%s341_s0] sm:$0xff]  ;;  %216 = vset.pattern.permute.xlu0 %v246_v1 }
   0x2   :  { %7 = vsyncpa [#allocation3], 0  ;;  %15 = vperm.xlu0 %216, %v12_v0   ;;  %v247_v2 = vmov 1   ;;  %v18_v3 = vlaneseq  ;;  %v218_v6 = vld [vmem:[%s342_s1] ss:$0 sm:$0xff]  ;;  %s254_s0 = smov [#allocation2]  }
   0x3   :  { %v219_v7 = vld [vmem:[%s342_s1 + $0x1] ss:$0 sm:$0xff]  ;;  %v248_v23 = vmov 2102212464   ;;  %v249_v25 = vmov 920167782  }
   0x4   :  { %v19_v5 = vand.u32 127, %v18_v3  ;;  %v250_v28 = vmov 1326507024   ;;  %v251_v30 = vmov 683565275   ;;  %s193_s1 = sshll.u32 %s254_s0, 4  ;;  %s194_s1 = int_to_ptr.vmem [resolvable:$true] %s193_s1 }
   0x5   :  { %v252_v32 = vmov 2475754826   ;;  %v253_v35 = vmov 2131351028   ;;  %s195_s17 = sshll.u32 %s343_s2, 4  ;;  %s196_s17 = int_to_ptr.hbm [resolvable:$true] %s195_s17 }
   0x6   :  { %vm20_vm0 = vcmp.ge.s32.totalorder %v19_v5, 64 }
   0xa   :  { %217 = vset.pattern.permute.xlu0 %v247_v2 }
   0xb   :  { %22 = vperm.xlu0 %217, %v12_v0  }
  0x74   :  { %v16_v4 = vpop.permute.xlu0 %15 }
  0x7d   :  { %v23_v8 = vpop.permute.xlu0 %22 }
  0x7e   :  { %v25_v9 = vsel %vm20_vm0, %v23_v8, %v16_v4 }
  0x7f   :  { %v28_v10 = vmul.f32 %v218_v6, %v25_v9 }
  0x81   :  { %v280_v11 = vadd.f32 %v219_v7, %v28_v10 }
  0x83   :  { %v35_v12 = vand.u32 2139095040, %v280_v11  ;;  %v32_v15 = vand.u32 2147483647, %v280_v11  ;;  %vm34_vm13 = vcmp.lt.s32.totalorder %v280_v11, 0 }
  0x85   :  { %v36_v13 = vshrl.u32 %v35_v12, 23  ;;  %v39_v17 = vand.u32 8388607, %v32_v15  ;;  %vm33_vm14 = vcmp.le.f32.partialorder %v32_v15, 0.7853982 }
  0x87   :  { %v204_v14 = vadd.s32 4294967169, %v36_v13  ;;  %v40_v21 = vor.u32 8388608, %v39_v17 }
  0x89   :  { %v42_v16 = vadd.s32 1, %v204_v14  ;;  %v295_v42 = vshll.u32 %v40_v21, 8 }
  0x8b   :  { %vm43_vm1 = vcmp.gt.s32.totalorder %v42_v16, 0  ;;  %v81_v52 = vand.u32 65535, %v295_v42  ;;  %v82_v54 = vshrl.u32 %v295_v42, 16 }
  0x8c   :  { %v44_v18 = vsel %vm43_vm1, %v42_v16, 0 }
  0x8d   :  { %v46_v19 = vand.u32 31, %v44_v18  ;;  %v288_v22 = vshrl.u32 %v44_v18, 5 }
  0x8f   :  { %v286_v20 = vsub.s32 32, %v46_v19  ;;  %v58_v24 = vshll.u32 %v248_v23, %v46_v19  ;;  %v61_v26 = vshll.u32 %v249_v25, %v46_v19  ;;  %v49_v31 = vshll.u32 %v251_v30, %v46_v19 }
  0x90   :  { %v52_v34 = vshll.u32 %v252_v32, %v46_v19  ;;  %v55_v37 = vshll.u32 %v253_v35, %v46_v19  ;;  %vm67_vm2 = vcmp.lt.s32.totalorder %v288_v22, 4  ;;  %vm64_vm3 = vcmp.lt.s32.totalorder %v288_v22, 1 }
  0x91   :  { %v59_v27 = vshrl.u32 %v249_v25, %v286_v20  ;;  %v62_v29 = vshrl.u32 %v250_v28, %v286_v20  ;;  %v50_v33 = vshrl.u32 %v252_v32, %v286_v20  ;;  %v53_v36 = vshrl.u32 %v253_v35, %v286_v20 }
  0x92   :  { %v56_v38 = vshrl.u32 %v248_v23, %v286_v20  ;;  %vm66_vm4 = vcmp.lt.s32.totalorder %v288_v22, 3  ;;  %vm65_vm5 = vcmp.lt.s32.totalorder %v288_v22, 2  ;;  %v48_v16 = vshrl.u32 %v251_v30, %v286_v20 }
  0x93   :  { %v60_v39 = vor.u32 %v59_v27, %v58_v24  ;;  %v63_v40 = vor.u32 %v62_v29, %v61_v26  ;;  %v51_v41 = vor.u32 %v50_v33, %v49_v31  ;;  %v54_v43 = vor.u32 %v53_v36, %v52_v34 }
  0x94   :  { %v57_v44 = vor.u32 %v56_v38, %v55_v37 }
  0x95   :  { %v73_v45 = vsel %vm67_vm2, %v60_v39, 920167782  ;;  %v77_v46 = vsel %vm67_vm2, %v63_v40, 1326507024  ;;  %v72_v47 = vsel %vm64_vm3, %v51_v41, %v54_v43  ;;  %v68_v24 = vsel %vm64_vm3, %v48_v16, %v51_v41 }
  0x96   :  { %v74_v48 = vsel %vm66_vm4, %v57_v44, %v73_v45  ;;  %v76_v49 = vsel %vm64_vm3, %v54_v43, %v57_v44  ;;  %v78_v51 = vsel %vm66_vm4, %v60_v39, %v77_v46  ;;  %v69_v12 = vsel %vm67_vm2, %v57_v44, 2102212464 }
  0x97   :  { %v75_v50 = vsel %vm65_vm5, %v72_v47, %v74_v48  ;;  %v79_v53 = vsel %vm65_vm5, %v76_v49, %v78_v51  ;;  %v70_v25 = vsel %vm66_vm4, %v54_v43, %v69_v12  ;;  %vm175_vm2 = vweird.f32 %v280_v11 }
  0x98   :  { %v105_v55 = vand.u32 65535, %v75_v50  ;;  %v106_v56 = vshrl.u32 %v75_v50, 16  ;;  %v83_v57 = vand.u32 65535, %v79_v53  ;;  %v84_v58 = vshrl.u32 %v79_v53, 16 }
  0x99   :  { %v71_v30 = vsel %vm65_vm5, %v68_v24, %v70_v25 }
  0x9a   :  { %v108_v59 = vmul.u32 %v106_v56, %v81_v52  ;;  %v109_v60 = vmul.u32 %v105_v55, %v82_v54  ;;  %v86_v61 = vmul.u32 %v84_v58, %v81_v52  ;;  %v87_v62 = vmul.u32 %v83_v57, %v82_v54 }
  0x9b   :  { %v107_v63 = vmul.u32 %v105_v55, %v81_v52  ;;  %v85_v2 = vmul.u32 %v83_v57, %v81_v52  ;;  %v110_v4 = vmul.u32 %v106_v56, %v82_v54  ;;  %v88_v5 = vmul.u32 %v84_v58, %v82_v54 }
  0x9c   :  { %v111_v0 = vshll.u32 %v108_v59, 16  ;;  %v89_v3 = vshll.u32 %v86_v61, 16  ;;  %v113_v6 = vshll.u32 %v109_v60, 16  ;;  %v91_v8 = vshll.u32 %v87_v62, 16 }
  0x9d   :  { %v112_v21 = vshrl.u32 %v108_v59, 16  ;;  %v90_v26 = vshrl.u32 %v86_v61, 16  ;;  %v114_v28 = vshrl.u32 %v109_v60, 16  ;;  %v92_v31 = vshrl.u32 %v87_v62, 16 }
  0x9e   :  { %vm115_vm6 = vc.u32 %v107_v63, %v111_v0  ;;  %v117_v7 = vadd.s32 %v111_v0, %v107_v63  ;;  %vm93_vm7 = vc.u32 %v85_v2, %v89_v3  ;;  %v95_v9 = vadd.s32 %v89_v3, %v85_v2 }
  0x9f   :  { %v116_v10 = vsel %vm115_vm6, 1, %v246_v1  ;;  %v94_v13 = vsel %vm93_vm7, 1, %v246_v1  ;;  %v125_v35 = vmul.u32 %v295_v42, %v71_v30 }
  0xa0   :  { %v118_v14 = vadd.s32 %v116_v10, %v110_v4  ;;  %vm119_vm8 = vc.u32 %v117_v7, %v113_v6  ;;  %v96_v17 = vadd.s32 %v94_v13, %v88_v5  ;;  %vm97_vm9 = vc.u32 %v95_v9, %v91_v8 }
  0xa1   :  { %v120_v18 = vsel %vm119_vm8, 1, %v246_v1  ;;  %v98_v19 = vsel %vm97_vm9, 1, %v246_v1  ;;  %v121_v1 = vadd.s32 %v117_v7, %v113_v6 }
  0xa2   :  { %v122_v23 = vadd.s32 %v120_v18, %v118_v14  ;;  %v100_v27 = vadd.s32 %v98_v19, %v96_v17 }
  0xa4   :  { %v123_v29 = vadd.s32 %v122_v23, %v112_v21  ;;  %v101_v20 = vadd.s32 %v100_v27, %v90_v26 }
  0xa6   :  { %v124_v32 = vadd.s32 %v123_v29, %v114_v28  ;;  %v102_v33 = vadd.s32 %v101_v20, %v92_v31 }
  0xa8   :  { %v128_v34 = vadd.s32 1, %v124_v32  ;;  %vm127_vm10 = vc.u32 %v102_v33, %v121_v1  ;;  %v126_v47 = vadd.s32 %v121_v1, %v102_v33 }
  0xaa   :  { %v129_v36 = vsel %vm127_vm10, %v128_v34, %v124_v32 }
  0xab   :  { %v130_v37 = vadd.s32 %v129_v36, %v125_v35 }
  0xad   :  { %v131_v38 = vadd.s32 536870912, %v130_v37 }
  0xaf   :  { %v132_v39 = vshrl.u32 %v131_v38, 30 }
  0xb1   :  { %v133_v40 = vshll.u32 %v132_v39, 30  ;;  %v156_v60 = vsub.s32 4, %v132_v39 }
  0xb3   :  { %v134_v41 = vsub.s32 %v130_v37, %v133_v40  ;;  %v157_v2 = vsel %vm34_vm13, %v156_v60, %v132_v39 }
  0xb4   :  { %v159_v5 = vsel %vm33_vm14, 0, %v157_v2 }
  0xb5   :  { %vm135_vm11 = vcmp.lt.s32.totalorder %v134_v41, 0  ;;  %v136_v43 = vsub.s32 0, %v134_v41  ;;  %v176_v10 = vadd.s32 3, %v159_v5 }
  0xb7   :  { %v137_v44 = vsel %vm135_vm11, %v136_v43, %v134_v41  ;;  %v177_v16 = vand.u32 3, %v176_v10 }
  0xb8   :  { %v138_v45 = vclz %v137_v44 }
  0xb9   :  { %vm179_vm15 = vcmp.eq.s32.totalorder %v177_v16, 0  ;;  %vm182_vm0 = vcmp.eq.s32.totalorder %v177_v16, 2  ;;  %vm178_vm1 = vcmp.lt.s32.totalorder %v177_v16, 2 }
  0xba   :  { %v205_v46 = vadd.s32 4294967294, %v138_v45 }
  0xbc   :  { %vm206_vm12 = vcmp.lt.s32.totalorder %v205_v46, 0 }
  0xbd   :  { %v141_v22 = vsel %vm206_vm12, 0, %v205_v46 }
  0xbe   :  { %v142_v48 = vsub.s32 32, %v141_v22  ;;  %v146_v49 = vsub.s32 4294967266, %v141_v22  ;;  %v143_v50 = vshll.u32 %v134_v41, %v141_v22 }
  0xc0   :  { %v144_v51 = vshrl.u32 %v126_v47, %v142_v48  ;;  %v147_v42 = vadd.s32 127, %v146_v49 }
  0xc2   :  { %v145_v52 = vor.u32 %v144_v51, %v143_v50  ;;  %v148_v53 = vshll.u32 %v147_v42, 23 }
  0xc4   :  { %v149_v54 = vor.u32 4788187, %v148_v53  ;;  %v152_v56 = vcvt.s32.f32 %v145_v52 }
  0xc6   :  { %v150_v55 = vand.u32 2147483647, %v149_v54 }
  0xc8   :  { %v153_v57 = vmul.f32 %v152_v56, %v150_v55 }
  0xca   :  { %v154_v58 = vxor.u32 2147483648, %v153_v57 }
  0xcc   :  { %v155_v59 = vsel %vm34_vm13, %v154_v58, %v153_v57 }
  0xcd   :  { %v158_v61 = vsel %vm33_vm14, %v280_v11, %v155_v59 }
  0xce   :  { %v160_v62 = vmul.f32 %v158_v61, %v158_v61 }
  0xd0   :  { %v161_v63 = vmul.f32 -0.001358992, %v160_v62  ;;  %v168_v0 = vmul.f32 -0.00019511016, %v160_v62 }
  0xd2   :  { %v162_v3 = vadd.f32 0.041655596, %v161_v63  ;;  %v169_v4 = vadd.f32 0.008332121, %v168_v0 }
  0xd4   :  { %v163_v6 = vmul.f32 %v162_v3, %v160_v62  ;;  %v170_v7 = vmul.f32 %v169_v4, %v160_v62 }
  0xd6   :  { %v164_v8 = vadd.f32 -0.4999988, %v163_v6  ;;  %v171_v9 = vadd.f32 -0.16666654, %v170_v7 }
  0xd8   :  { %v165_v12 = vmul.f32 %v164_v8, %v160_v62  ;;  %v172_v13 = vmul.f32 %v171_v9, %v160_v62 }
  0xda   :  { %v166_v14 = vadd.f32 1.0, %v165_v12  ;;  %v173_v15 = vadd.f32 1.0, %v172_v13 }
  0xdc   :  { %v174_v17 = vmul.f32 %v173_v15, %v158_v61  ;;  %v183_v18 = vxor.u32 2147483648, %v166_v14 }
  0xde   :  { %v180_v19 = vxor.u32 2147483648, %v174_v17  ;;  %v184_v23 = vsel %vm182_vm0, %v183_v18, %v174_v17 }
  0xe0   :  { %v181_v21 = vsel %vm179_vm15, %v166_v14, %v180_v19 }
  0xe1   :  { %v185_v24 = vsel %vm178_vm1, %v181_v21, %v184_v23 }
  0xe2   :  { %v186_v25 = vsel %vm175_vm2, nan, %v185_v24 }
  0xe3   :  { %187 = vst [vmem:[#allocation2] sm:$0xff] %v186_v25 }
  0xe4   :  { %198 = dma.vmem_to_hbm [thread:$0]  %s194_s1, 128, %s196_s17, [#allocation3]  }
  0xe5   :  { %244 = dma.done.wait [#allocation3], 128  }
  0xe6   :  { %245 = vsyncadd [#allocation3], 4294967168 }
  0xe7   :  { %203 = vsyncpa [#allocation3], 1 }

</bundles_post_ra>
